<compile_context>
chip_gen: v6e
topology: v6e:2x2x1
jax: 0.10.0
libtpu: 0.0.40
codegen_flags: <defaults>
</compile_context>

<pallas_src>
import jax
import jax.numpy as jnp
from jax import lax
from jax.experimental import pallas as pl
from jax.experimental.pallas import tpu as pltpu

INPUT_SIZE = 4
HIDDEN = 32
GATES = 4 * HIDDEN  # 128 = exactly one lane width


def lstm_fc_kernel(x_ref, wih_ref, whh_ref, b_ref, wfc_ref, bfc_ref, out_ref):
    """Whole-sequence LSTM + final Linear, single invocation (no grid).

    x_ref   : (S*Bp, 4)    f32  time-major flattened input, batch padded to Bp
    wih_ref : (4, 128)     f32  fused input->hidden weights, gate order i|f|g|o
    whh_ref : (32, 128)    f32  fused hidden->hidden weights, gate order i|f|g|o
    b_ref   : (1, 128)     f32  fused bias (b_ih + b_hh)
    wfc_ref : (32, 128)    f32  fc weight, output dim zero-padded to 128 lanes
    bfc_ref : (1, 128)     f32  fc bias, zero-padded to 128 lanes
    out_ref : (Bp, 128)    f32  padded logits (wrapper slices to (B, C))
    """
    Bp = out_ref.shape[0]
    S = x_ref.shape[0] // Bp
    H = HIDDEN

    # Hoisted input projection + bias for the WHOLE sequence: one MXU op,
    # off the serial h-chain.  (S*Bp, 4) @ (4, 128) + (1, 128)
    xih = (
        jnp.dot(x_ref[...], wih_ref[...], preferred_element_type=jnp.float32)
        + b_ref[...]
    )

    # Lane mask: tanh on the g-gate lanes [2H, 3H), sigmoid elsewhere.
    lane = lax.broadcasted_iota(jnp.int32, (Bp, GATES), 1)
    is_g = (lane >= 2 * H) & (lane < 3 * H)

    whh = whh_ref[...]  # keep resident in vregs across the unrolled loop

    h = jnp.zeros((Bp, H), jnp.float32)
    c = jnp.zeros((Bp, H), jnp.float32)

    # Fully unrolled recurrence (S is a static compile-time constant).
    for t in range(S):
        pre = xih[t * Bp:(t + 1) * Bp, :] + jnp.dot(
            h, whh, preferred_element_type=jnp.float32
        )  # (Bp, 128)
        act = jnp.where(is_g, jnp.tanh(pre), jax.nn.sigmoid(pre))
        i_g = act[:, 0 * H:1 * H]
        f_g = act[:, 1 * H:2 * H]
        g_g = act[:, 2 * H:3 * H]
        o_g = act[:, 3 * H:4 * H]
        c = f_g * c + i_g * g_g
        h = o_g * jnp.tanh(c)

    # Final Linear on the last hidden state; lane-dense (128-wide) store.
    out_ref[...] = (
        jnp.dot(h, wfc_ref[...], preferred_element_type=jnp.float32) + bfc_ref[...]
    ).astype(out_ref.dtype)


def hexin3_lstm_forward(x, params):
    """x: (B, S, 4) batch-first float input (same as the PyTorch module's x)."""
    w_ih, w_hh, b_ih, b_hh, w_fc, b_fc = params
    B, S, _ = x.shape
    C = w_fc.shape[0]

    Bp = ((B + 7) // 8) * 8          # pad batch to f32 sublane multiple
    Cp = ((C + 127) // 128) * 128    # pad FC output to lane multiple

    # glue: permute(1, 0, 2), batch padding, flatten time-major to (S*Bp, 4)
    x_tm = jnp.transpose(x, (1, 0, 2)).astype(jnp.float32)              # (S, B, 4)
    x_pad = jnp.zeros((S, Bp, INPUT_SIZE), jnp.float32).at[:, :B, :].set(x_tm)
    x_flat = x_pad.reshape(S * Bp, INPUT_SIZE)                          # (S*Bp, 4)

    # PyTorch stores gates stacked along rows of (4H, I)/(4H, H) in order
    # i,f,g,o; transposing gives right-multiply matrices with the same gate
    # order i|f|g|o along the last (lane) axis.
    wih_all = jnp.transpose(w_ih).astype(jnp.float32)                   # (4, 128)
    whh_all = jnp.transpose(w_hh).astype(jnp.float32)                   # (32, 128)
    b_all = (b_ih + b_hh).astype(jnp.float32).reshape(1, GATES)         # (1, 128)

    wfc = jnp.zeros((HIDDEN, Cp), jnp.float32).at[:, :C].set(
        jnp.transpose(w_fc).astype(jnp.float32))                        # (32, Cp)
    bfc = jnp.zeros((1, Cp), jnp.float32).at[0, :C].set(
        b_fc.astype(jnp.float32))                                       # (1, Cp)

    vmem = pl.BlockSpec(memory_space=pltpu.MemorySpace.VMEM)
    out_pad = pl.pallas_call(
        lstm_fc_kernel,
        out_shape=jax.ShapeDtypeStruct((Bp, Cp), jnp.float32),
        in_specs=[vmem] * 6,
        out_specs=vmem,
    )(x_flat, wih_all, whh_all, b_all, wfc, bfc)

    return out_pad[:B, :C]


def reference_forward(x, params):
    """Pure-JAX re-statement of the PyTorch forward, for verification."""
    w_ih, w_hh, b_ih, b_hh, w_fc, b_fc = params
    x_tm = jnp.transpose(x, (1, 0, 2)).astype(jnp.float32)
    B = x.shape[0]
    h = jnp.zeros((B, HIDDEN), jnp.float32)
    c = jnp.zeros((B, HIDDEN), jnp.float32)
    for t in range(x_tm.shape[0]):
        gates = x_tm[t] @ w_ih.T + h @ w_hh.T + b_ih + b_hh
        i, f, g, o = jnp.split(gates, 4, axis=-1)
        i = jax.nn.sigmoid(i)
        f = jax.nn.sigmoid(f)
        g = jnp.tanh(g)
        o = jax.nn.sigmoid(o)
        c = f * c + i * g
        h = o * jnp.tanh(c)
    return h @ w_fc.T + b_fc


def init_params(key, num_classes):
    """Deterministic synthetic params with PyTorch shapes & init scale."""
    ks = jax.random.split(key, 6)
    scale = 1.0 / jnp.sqrt(HIDDEN)
    w_ih = jax.random.uniform(ks[0], (4 * HIDDEN, INPUT_SIZE), jnp.float32, -scale, scale)
    w_hh = jax.random.uniform(ks[1], (4 * HIDDEN, HIDDEN), jnp.float32, -scale, scale)
    b_ih = jax.random.uniform(ks[2], (4 * HIDDEN,), jnp.float32, -scale, scale)
    b_hh = jax.random.uniform(ks[3], (4 * HIDDEN,), jnp.float32, -scale, scale)
    w_fc = jax.random.uniform(ks[4], (num_classes, HIDDEN), jnp.float32, -scale, scale)
    b_fc = jax.random.uniform(ks[5], (num_classes,), jnp.float32, -scale, scale)
    return (w_ih, w_hh, b_ih, b_hh, w_fc, b_fc)


if __name__ == "__main__":
    key = jax.random.PRNGKey(0)
    k_param, k_x = jax.random.split(key)

    num_classes = 10
    batch, seq = 2, 8
    params = init_params(k_param, num_classes)
    x = jax.random.normal(k_x, (batch, seq, INPUT_SIZE), jnp.float32)

    out = hexin3_lstm_forward(x, params)
    out = jax.block_until_ready(out)

    ref = jax.block_until_ready(reference_forward(x, params))
    assert out.shape == (batch, num_classes)
    assert jnp.allclose(out, ref, atol=1e-5, rtol=1e-5), "mismatch vs JAX reference"

    print("KERNEL_OK")
</pallas_src>

<mosaic_0001>
module attributes {stable_mosaic.version = 11 : i64} {
  func.func @lstm_fc_kernel(%arg0: memref<64x4xf32, #tpu.memory_space<vmem>>, %arg1: memref<4x128xf32, #tpu.memory_space<vmem>>, %arg2: memref<32x128xf32, #tpu.memory_space<vmem>>, %arg3: memref<1x128xf32, #tpu.memory_space<vmem>>, %arg4: memref<32x128xf32, #tpu.memory_space<vmem>>, %arg5: memref<1x128xf32, #tpu.memory_space<vmem>>, %arg6: memref<8x128xf32, #tpu.memory_space<vmem>>) attributes {dimension_semantics = [], scalar_prefetch = 0 : i64, scratch_operands = 0 : i64, tpu.core_type = #tpu.core_type<tc>} {
    %c0 = arith.constant 0 : index
    %c0_0 = arith.constant 0 : index
    %0 = vector.load %arg0[%c0, %c0_0] : memref<64x4xf32, #tpu.memory_space<vmem>>, vector<64x4xf32>
    %c0_1 = arith.constant 0 : index
    %c0_2 = arith.constant 0 : index
    %1 = vector.load %arg1[%c0_1, %c0_2] : memref<4x128xf32, #tpu.memory_space<vmem>>, vector<4x128xf32>
    %cst = arith.constant dense<0.000000e+00> : vector<64x128xf32>
    %2 = tpu.matmul %0, %1, %cst {dimension_numbers = #tpu.dot_dimension_numbers<[1], [0], [0], [1], [0, 0, 1, 1], [], []>} : vector<64x4xf32>, vector<4x128xf32>, vector<64x128xf32> -> vector<64x128xf32>
    %c0_3 = arith.constant 0 : index
    %c0_4 = arith.constant 0 : index
    %3 = vector.load %arg3[%c0_3, %c0_4] : memref<1x128xf32, #tpu.memory_space<vmem>>, vector<1x128xf32>
    %4 = vector.broadcast %3 : vector<1x128xf32> to vector<64x128xf32>
    %5 = arith.addf %2, %4 : vector<64x128xf32>
    %6 = tpu.iota {dimensions = array<i32: 1>} : vector<8x128xi32>
    %c64_i32 = arith.constant 64 : i32
    %7 = vector.broadcast %c64_i32 : i32 to vector<8x128xi32>
    %8 = arith.cmpi sge, %6, %7 : vector<8x128xi32>
    %c96_i32 = arith.constant 96 : i32
    %9 = vector.broadcast %c96_i32 : i32 to vector<8x128xi32>
    %10 = arith.cmpi slt, %6, %9 : vector<8x128xi32>
    %11 = arith.andi %8, %10 : vector<8x128xi1>
    %c0_5 = arith.constant 0 : index
    %c0_6 = arith.constant 0 : index
    %12 = vector.load %arg2[%c0_5, %c0_6] : memref<32x128xf32, #tpu.memory_space<vmem>>, vector<32x128xf32>
    %cst_7 = arith.constant 0.000000e+00 : f32
    %13 = vector.broadcast %cst_7 : f32 to vector<8x32xf32>
    %cst_8 = arith.constant 0.000000e+00 : f32
    %14 = vector.broadcast %cst_8 : f32 to vector<8x32xf32>
    %15 = vector.extract_strided_slice %5 {offsets = [0, 0], sizes = [8, 128], strides = [1, 1]} : vector<64x128xf32> to vector<8x128xf32>
    %cst_9 = arith.constant dense<0.000000e+00> : vector<8x128xf32>
    %16 = tpu.matmul %13, %12, %cst_9 {dimension_numbers = #tpu.dot_dimension_numbers<[1], [0], [0], [1], [0, 0, 1, 1], [], []>} : vector<8x32xf32>, vector<32x128xf32>, vector<8x128xf32> -> vector<8x128xf32>
    %17 = arith.addf %15, %16 : vector<8x128xf32>
    %18 = math.tanh %17 : vector<8x128xf32>
    %19 = arith.negf %17 : vector<8x128xf32>
    %20 = math.exp %19 : vector<8x128xf32>
    %cst_10 = arith.constant 1.000000e+00 : f32
    %21 = vector.broadcast %cst_10 : f32 to vector<8x128xf32>
    %22 = arith.addf %21, %20 : vector<8x128xf32>
    %23 = arith.divf %21, %22 : vector<8x128xf32>
    %24 = arith.select %11, %18, %23 : vector<8x128xi1>, vector<8x128xf32>
    %25 = vector.extract_strided_slice %24 {offsets = [0, 0], sizes = [8, 32], strides = [1, 1]} : vector<8x128xf32> to vector<8x32xf32>
    %26 = vector.extract_strided_slice %24 {offsets = [0, 32], sizes = [8, 32], strides = [1, 1]} : vector<8x128xf32> to vector<8x32xf32>
    %27 = vector.extract_strided_slice %24 {offsets = [0, 64], sizes = [8, 32], strides = [1, 1]} : vector<8x128xf32> to vector<8x32xf32>
    %28 = vector.extract_strided_slice %24 {offsets = [0, 96], sizes = [8, 32], strides = [1, 1]} : vector<8x128xf32> to vector<8x32xf32>
    %29 = arith.mulf %26, %14 : vector<8x32xf32>
    %30 = arith.mulf %25, %27 : vector<8x32xf32>
    %31 = arith.addf %29, %30 : vector<8x32xf32>
    %32 = math.tanh %31 : vector<8x32xf32>
    %33 = arith.mulf %28, %32 : vector<8x32xf32>
    %34 = vector.extract_strided_slice %5 {offsets = [8, 0], sizes = [8, 128], strides = [1, 1]} : vector<64x128xf32> to vector<8x128xf32>
    %cst_11 = arith.constant dense<0.000000e+00> : vector<8x128xf32>
    %35 = tpu.matmul %33, %12, %cst_11 {dimension_numbers = #tpu.dot_dimension_numbers<[1], [0], [0], [1], [0, 0, 1, 1], [], []>} : vector<8x32xf32>, vector<32x128xf32>, vector<8x128xf32> -> vector<8x128xf32>
    %36 = arith.addf %34, %35 : vector<8x128xf32>
    %37 = math.tanh %36 : vector<8x128xf32>
    %38 = arith.negf %36 : vector<8x128xf32>
    %39 = math.exp %38 : vector<8x128xf32>
    %cst_12 = arith.constant 1.000000e+00 : f32
    %40 = vector.broadcast %cst_12 : f32 to vector<8x128xf32>
    %41 = arith.addf %40, %39 : vector<8x128xf32>
    %42 = arith.divf %40, %41 : vector<8x128xf32>
    %43 = arith.select %11, %37, %42 : vector<8x128xi1>, vector<8x128xf32>
    %44 = vector.extract_strided_slice %43 {offsets = [0, 0], sizes = [8, 32], strides = [1, 1]} : vector<8x128xf32> to vector<8x32xf32>
    %45 = vector.extract_strided_slice %43 {offsets = [0, 32], sizes = [8, 32], strides = [1, 1]} : vector<8x128xf32> to vector<8x32xf32>
    %46 = vector.extract_strided_slice %43 {offsets = [0, 64], sizes = [8, 32], strides = [1, 1]} : vector<8x128xf32> to vector<8x32xf32>
    %47 = vector.extract_strided_slice %43 {offsets = [0, 96], sizes = [8, 32], strides = [1, 1]} : vector<8x128xf32> to vector<8x32xf32>
    %48 = arith.mulf %45, %31 : vector<8x32xf32>
    %49 = arith.mulf %44, %46 : vector<8x32xf32>
    %50 = arith.addf %48, %49 : vector<8x32xf32>
    %51 = math.tanh %50 : vector<8x32xf32>
    %52 = arith.mulf %47, %51 : vector<8x32xf32>
    %53 = vector.extract_strided_slice %5 {offsets = [16, 0], sizes = [8, 128], strides = [1, 1]} : vector<64x128xf32> to vector<8x128xf32>
    %cst_13 = arith.constant dense<0.000000e+00> : vector<8x128xf32>
    %54 = tpu.matmul %52, %12, %cst_13 {dimension_numbers = #tpu.dot_dimension_numbers<[1], [0], [0], [1], [0, 0, 1, 1], [], []>} : vector<8x32xf32>, vector<32x128xf32>, vector<8x128xf32> -> vector<8x128xf32>
    %55 = arith.addf %53, %54 : vector<8x128xf32>
    %56 = math.tanh %55 : vector<8x128xf32>
    %57 = arith.negf %55 : vector<8x128xf32>
    %58 = math.exp %57 : vector<8x128xf32>
    %cst_14 = arith.constant 1.000000e+00 : f32
    %59 = vector.broadcast %cst_14 : f32 to vector<8x128xf32>
    %60 = arith.addf %59, %58 : vector<8x128xf32>
    %61 = arith.divf %59, %60 : vector<8x128xf32>
    %62 = arith.select %11, %56, %61 : vector<8x128xi1>, vector<8x128xf32>
    %63 = vector.extract_strided_slice %62 {offsets = [0, 0], sizes = [8, 32], strides = [1, 1]} : vector<8x128xf32> to vector<8x32xf32>
    %64 = vector.extract_strided_slice %62 {offsets = [0, 32], sizes = [8, 32], strides = [1, 1]} : vector<8x128xf32> to vector<8x32xf32>
    %65 = vector.extract_strided_slice %62 {offsets = [0, 64], sizes = [8, 32], strides = [1, 1]} : vector<8x128xf32> to vector<8x32xf32>
    %66 = vector.extract_strided_slice %62 {offsets = [0, 96], sizes = [8, 32], strides = [1, 1]} : vector<8x128xf32> to vector<8x32xf32>
    %67 = arith.mulf %64, %50 : vector<8x32xf32>
    %68 = arith.mulf %63, %65 : vector<8x32xf32>
    %69 = arith.addf %67, %68 : vector<8x32xf32>
    %70 = math.tanh %69 : vector<8x32xf32>
    %71 = arith.mulf %66, %70 : vector<8x32xf32>
    %72 = vector.extract_strided_slice %5 {offsets = [24, 0], sizes = [8, 128], strides = [1, 1]} : vector<64x128xf32> to vector<8x128xf32>
    %cst_15 = arith.constant dense<0.000000e+00> : vector<8x128xf32>
    %73 = tpu.matmul %71, %12, %cst_15 {dimension_numbers = #tpu.dot_dimension_numbers<[1], [0], [0], [1], [0, 0, 1, 1], [], []>} : vector<8x32xf32>, vector<32x128xf32>, vector<8x128xf32> -> vector<8x128xf32>
    %74 = arith.addf %72, %73 : vector<8x128xf32>
    %75 = math.tanh %74 : vector<8x128xf32>
    %76 = arith.negf %74 : vector<8x128xf32>
    %77 = math.exp %76 : vector<8x128xf32>
    %cst_16 = arith.constant 1.000000e+00 : f32
    %78 = vector.broadcast %cst_16 : f32 to vector<8x128xf32>
    %79 = arith.addf %78, %77 : vector<8x128xf32>
    %80 = arith.divf %78, %79 : vector<8x128xf32>
    %81 = arith.select %11, %75, %80 : vector<8x128xi1>, vector<8x128xf32>
    %82 = vector.extract_strided_slice %81 {offsets = [0, 0], sizes = [8, 32], strides = [1, 1]} : vector<8x128xf32> to vector<8x32xf32>
    %83 = vector.extract_strided_slice %81 {offsets = [0, 32], sizes = [8, 32], strides = [1, 1]} : vector<8x128xf32> to vector<8x32xf32>
    %84 = vector.extract_strided_slice %81 {offsets = [0, 64], sizes = [8, 32], strides = [1, 1]} : vector<8x128xf32> to vector<8x32xf32>
    %85 = vector.extract_strided_slice %81 {offsets = [0, 96], sizes = [8, 32], strides = [1, 1]} : vector<8x128xf32> to vector<8x32xf32>
    %86 = arith.mulf %83, %69 : vector<8x32xf32>
    %87 = arith.mulf %82, %84 : vector<8x32xf32>
    %88 = arith.addf %86, %87 : vector<8x32xf32>
    %89 = math.tanh %88 : vector<8x32xf32>
    %90 = arith.mulf %85, %89 : vector<8x32xf32>
    %91 = vector.extract_strided_slice %5 {offsets = [32, 0], sizes = [8, 128], strides = [1, 1]} : vector<64x128xf32> to vector<8x128xf32>
    %cst_17 = arith.constant dense<0.000000e+00> : vector<8x128xf32>
    %92 = tpu.matmul %90, %12, %cst_17 {dimension_numbers = #tpu.dot_dimension_numbers<[1], [0], [0], [1], [0, 0, 1, 1], [], []>} : vector<8x32xf32>, vector<32x128xf32>, vector<8x128xf32> -> vector<8x128xf32>
    %93 = arith.addf %91, %92 : vector<8x128xf32>
    %94 = math.tanh %93 : vector<8x128xf32>
    %95 = arith.negf %93 : vector<8x128xf32>
    %96 = math.exp %95 : vector<8x128xf32>
    %cst_18 = arith.constant 1.000000e+00 : f32
    %97 = vector.broadcast %cst_18 : f32 to vector<8x128xf32>
    %98 = arith.addf %97, %96 : vector<8x128xf32>
    %99 = arith.divf %97, %98 : vector<8x128xf32>
    %100 = arith.select %11, %94, %99 : vector<8x128xi1>, vector<8x128xf32>
    %101 = vector.extract_strided_slice %100 {offsets = [0, 0], sizes = [8, 32], strides = [1, 1]} : vector<8x128xf32> to vector<8x32xf32>
    %102 = vector.extract_strided_slice %100 {offsets = [0, 32], sizes = [8, 32], strides = [1, 1]} : vector<8x128xf32> to vector<8x32xf32>
    %103 = vector.extract_strided_slice %100 {offsets = [0, 64], sizes = [8, 32], strides = [1, 1]} : vector<8x128xf32> to vector<8x32xf32>
    %104 = vector.extract_strided_slice %100 {offsets = [0, 96], sizes = [8, 32], strides = [1, 1]} : vector<8x128xf32> to vector<8x32xf32>
    %105 = arith.mulf %102, %88 : vector<8x32xf32>
    %106 = arith.mulf %101, %103 : vector<8x32xf32>
    %107 = arith.addf %105, %106 : vector<8x32xf32>
    %108 = math.tanh %107 : vector<8x32xf32>
    %109 = arith.mulf %104, %108 : vector<8x32xf32>
    %110 = vector.extract_strided_slice %5 {offsets = [40, 0], sizes = [8, 128], strides = [1, 1]} : vector<64x128xf32> to vector<8x128xf32>
    %cst_19 = arith.constant dense<0.000000e+00> : vector<8x128xf32>
    %111 = tpu.matmul %109, %12, %cst_19 {dimension_numbers = #tpu.dot_dimension_numbers<[1], [0], [0], [1], [0, 0, 1, 1], [], []>} : vector<8x32xf32>, vector<32x128xf32>, vector<8x128xf32> -> vector<8x128xf32>
    %112 = arith.addf %110, %111 : vector<8x128xf32>
    %113 = math.tanh %112 : vector<8x128xf32>
    %114 = arith.negf %112 : vector<8x128xf32>
    %115 = math.exp %114 : vector<8x128xf32>
    %cst_20 = arith.constant 1.000000e+00 : f32
    %116 = vector.broadcast %cst_20 : f32 to vector<8x128xf32>
    %117 = arith.addf %116, %115 : vector<8x128xf32>
    %118 = arith.divf %116, %117 : vector<8x128xf32>
    %119 = arith.select %11, %113, %118 : vector<8x128xi1>, vector<8x128xf32>
    %120 = vector.extract_strided_slice %119 {offsets = [0, 0], sizes = [8, 32], strides = [1, 1]} : vector<8x128xf32> to vector<8x32xf32>
    %121 = vector.extract_strided_slice %119 {offsets = [0, 32], sizes = [8, 32], strides = [1, 1]} : vector<8x128xf32> to vector<8x32xf32>
    %122 = vector.extract_strided_slice %119 {offsets = [0, 64], sizes = [8, 32], strides = [1, 1]} : vector<8x128xf32> to vector<8x32xf32>
    %123 = vector.extract_strided_slice %119 {offsets = [0, 96], sizes = [8, 32], strides = [1, 1]} : vector<8x128xf32> to vector<8x32xf32>
    %124 = arith.mulf %121, %107 : vector<8x32xf32>
    %125 = arith.mulf %120, %122 : vector<8x32xf32>
    %126 = arith.addf %124, %125 : vector<8x32xf32>
    %127 = math.tanh %126 : vector<8x32xf32>
    %128 = arith.mulf %123, %127 : vector<8x32xf32>
    %129 = vector.extract_strided_slice %5 {offsets = [48, 0], sizes = [8, 128], strides = [1, 1]} : vector<64x128xf32> to vector<8x128xf32>
    %cst_21 = arith.constant dense<0.000000e+00> : vector<8x128xf32>
    %130 = tpu.matmul %128, %12, %cst_21 {dimension_numbers = #tpu.dot_dimension_numbers<[1], [0], [0], [1], [0, 0, 1, 1], [], []>} : vector<8x32xf32>, vector<32x128xf32>, vector<8x128xf32> -> vector<8x128xf32>
    %131 = arith.addf %129, %130 : vector<8x128xf32>
    %132 = math.tanh %131 : vector<8x128xf32>
    %133 = arith.negf %131 : vector<8x128xf32>
    %134 = math.exp %133 : vector<8x128xf32>
    %cst_22 = arith.constant 1.000000e+00 : f32
    %135 = vector.broadcast %cst_22 : f32 to vector<8x128xf32>
    %136 = arith.addf %135, %134 : vector<8x128xf32>
    %137 = arith.divf %135, %136 : vector<8x128xf32>
    %138 = arith.select %11, %132, %137 : vector<8x128xi1>, vector<8x128xf32>
    %139 = vector.extract_strided_slice %138 {offsets = [0, 0], sizes = [8, 32], strides = [1, 1]} : vector<8x128xf32> to vector<8x32xf32>
    %140 = vector.extract_strided_slice %138 {offsets = [0, 32], sizes = [8, 32], strides = [1, 1]} : vector<8x128xf32> to vector<8x32xf32>
    %141 = vector.extract_strided_slice %138 {offsets = [0, 64], sizes = [8, 32], strides = [1, 1]} : vector<8x128xf32> to vector<8x32xf32>
    %142 = vector.extract_strided_slice %138 {offsets = [0, 96], sizes = [8, 32], strides = [1, 1]} : vector<8x128xf32> to vector<8x32xf32>
    %143 = arith.mulf %140, %126 : vector<8x32xf32>
    %144 = arith.mulf %139, %141 : vector<8x32xf32>
    %145 = arith.addf %143, %144 : vector<8x32xf32>
    %146 = math.tanh %145 : vector<8x32xf32>
    %147 = arith.mulf %142, %146 : vector<8x32xf32>
    %148 = vector.extract_strided_slice %5 {offsets = [56, 0], sizes = [8, 128], strides = [1, 1]} : vector<64x128xf32> to vector<8x128xf32>
    %cst_23 = arith.constant dense<0.000000e+00> : vector<8x128xf32>
    %149 = tpu.matmul %147, %12, %cst_23 {dimension_numbers = #tpu.dot_dimension_numbers<[1], [0], [0], [1], [0, 0, 1, 1], [], []>} : vector<8x32xf32>, vector<32x128xf32>, vector<8x128xf32> -> vector<8x128xf32>
    %150 = arith.addf %148, %149 : vector<8x128xf32>
    %151 = math.tanh %150 : vector<8x128xf32>
    %152 = arith.negf %150 : vector<8x128xf32>
    %153 = math.exp %152 : vector<8x128xf32>
    %cst_24 = arith.constant 1.000000e+00 : f32
    %154 = vector.broadcast %cst_24 : f32 to vector<8x128xf32>
    %155 = arith.addf %154, %153 : vector<8x128xf32>
    %156 = arith.divf %154, %155 : vector<8x128xf32>
    %157 = arith.select %11, %151, %156 : vector<8x128xi1>, vector<8x128xf32>
    %158 = vector.extract_strided_slice %157 {offsets = [0, 0], sizes = [8, 32], strides = [1, 1]} : vector<8x128xf32> to vector<8x32xf32>
    %159 = vector.extract_strided_slice %157 {offsets = [0, 32], sizes = [8, 32], strides = [1, 1]} : vector<8x128xf32> to vector<8x32xf32>
    %160 = vector.extract_strided_slice %157 {offsets = [0, 64], sizes = [8, 32], strides = [1, 1]} : vector<8x128xf32> to vector<8x32xf32>
    %161 = vector.extract_strided_slice %157 {offsets = [0, 96], sizes = [8, 32], strides = [1, 1]} : vector<8x128xf32> to vector<8x32xf32>
    %162 = arith.mulf %159, %145 : vector<8x32xf32>
    %163 = arith.mulf %158, %160 : vector<8x32xf32>
    %164 = arith.addf %162, %163 : vector<8x32xf32>
    %165 = math.tanh %164 : vector<8x32xf32>
    %166 = arith.mulf %161, %165 : vector<8x32xf32>
    %c0_25 = arith.constant 0 : index
    %c0_26 = arith.constant 0 : index
    %167 = vector.load %arg4[%c0_25, %c0_26] : memref<32x128xf32, #tpu.memory_space<vmem>>, vector<32x128xf32>
    %cst_27 = arith.constant dense<0.000000e+00> : vector<8x128xf32>
    %168 = tpu.matmul %166, %167, %cst_27 {dimension_numbers = #tpu.dot_dimension_numbers<[1], [0], [0], [1], [0, 0, 1, 1], [], []>} : vector<8x32xf32>, vector<32x128xf32>, vector<8x128xf32> -> vector<8x128xf32>
    %c0_28 = arith.constant 0 : index
    %c0_29 = arith.constant 0 : index
    %169 = vector.load %arg5[%c0_28, %c0_29] : memref<1x128xf32, #tpu.memory_space<vmem>>, vector<1x128xf32>
    %170 = vector.broadcast %169 : vector<1x128xf32> to vector<8x128xf32>
    %171 = arith.addf %168, %170 : vector<8x128xf32>
    %c0_30 = arith.constant 0 : index
    %c0_31 = arith.constant 0 : index
    %172 = vector.load %arg6[%c0_30, %c0_31] : memref<8x128xf32, #tpu.memory_space<vmem>>, vector<8x128xf32>
    tpu.vector_store %arg6[%c0_30, %c0_31], %171 {strides = array<i32>} : memref<8x128xf32, #tpu.memory_space<vmem>>, vector<8x128xf32>,
    return
  }
}

</mosaic_0001>

<bundles_post_ra>
// kernel: tpu_custom_call.1
= control target key start
LH: loop header
LB: loop body
LE: loop exit
PB: predicated region body
PF: predicated region fallthrough
CT: control target
= control target key end

     0   :  { %vm65_vm0 = vcmask 1043456   ;;  %vm40_vm1 = vcmask 31744   ;;  %v1376_v2 = vmov 0.0   ;;  %s1661_s0 = inlined_call_operand.vmem [shape: f32[64,4], index: 0, kind: input, shape index: {}]   ;;  %s1662_s1 = inlined_call_operand.vmem [shape: f32[4,128], index: 1, kind: input, shape index: {}]   ;;  %s1663_s2 = inlined_call_operand.vmem [shape: f32[32,128], index: 2, kind: input, shape index: {}]   ;;  %s1664_s3 = inlined_call_operand.vmem [shape: f32[1,128], index: 3, kind: input, shape index: {}]   ;;  %s1665_s4 = inlined_call_operand.vmem [shape: f32[32,128], index: 4, kind: input, shape index: {}]   ;;  %s1666_s5 = inlined_call_operand.vmem [shape: f32[1,128], index: 5, kind: input, shape index: {}]   ;;  %s1667_s6 = inlined_call_operand.hbm [shape: f32[8,128], index: 6, kind: output, shape index: {}]  }
   0x1   :  { %v32_v0 = vld [vmem:[%s1662_s1] sm:$0xf]  ;;  %1186 = vmatprep.subr.mxu1 %v1376_v2  ;;  %v1426_v3 = vld [vmem:[%s1663_s2 + $0x18] sm:$0xff]  ;;  %v25_v4 = vld [vmem:[%s1661_s0 + $0x8] sm:$0xff] }
   0x2   :  { %v24_v1 = vld [vmem:[%s1661_s0] sm:$0xff]  ;;  %1172 = vmatprep.subr.msk.mxu0 %vm65_vm0, %v32_v0  ;;  %v1435_v5 = vld [vmem:[%s1663_s2 + $0x10] sm:$0xff] }
   0x3   :  { %1173 = vmatpush3.msk.msra.mxu0 %vm65_vm0, %v32_v0  ;;  %1174 = vmatprep.mubr.msk.f32.mxu0 %vm40_vm1, %v24_v1 }
   0x4   :  { %11 = vsyncpa [#allocation3], 0  ;;  %1187 = vmatpush3.msra.mxu1 %v1426_v3  ;;  %1175 = vmatmul.mubr.msk.f32.vlgmr.msra.gmra.mxu0 %vm40_vm1, %v25_v4  ;;  %v1443_v6 = vld [vmem:[%s1663_s2 + $0x8] sm:$0xff]  ;;  %vm1377_vm2 = vmmov 0   ;;  %v1453_v7 = vld [vmem:[%s1663_s2] sm:$0xff]  ;;  %v174_v18 = vlaneseq  ;;  %s1379_s11 = smov 32  }
   0x5   :  { %1188 = vmatprep.subr.mxu1 %v1376_v2  ;;  %1194 = vmatprep.mubr.msk.f32.mxu1 %vm1377_vm2, %v1376_v2  ;;  %v1481_v9 = vld [vmem:[%s1664_s3] ss:$0 sm:$0xff]  ;;  %s1378_s3 = smov 64   ;;  %vm183_vm6 = vcmask 261120   ;;  %v26_v48 = vld [vmem:[%s1661_s0 + $0x10] sm:$0xff]  ;;  %v27_v49 = vld [vmem:[%s1661_s0 + $0x18] sm:$0xff] }
   0x6   :  { %1189 = vmatpush3.msra.mxu1 %v1435_v5  ;;  %1208 = vmatprep.subr.mxu0 %v1376_v2  ;;  %v175_v19 = vand.u32 127, %v174_v18  ;;  %v28_v50 = vld [vmem:[%s1661_s0 + $0x20] sm:$0xff]  ;;  %v29_v51 = vld [vmem:[%s1661_s0 + $0x28] sm:$0xff]  ;;  %v30_v52 = vld [vmem:[%s1661_s0 + $0x30] sm:$0xff]  ;;  %s1380_s8 = smov [#allocation2]  }
   0x7   :  { %1190 = vmatprep.subr.mxu1 %v1376_v2  ;;  %1209 = vmatpush3.msra.mxu0 %v1426_v3  ;;  %v31_v53 = vld [vmem:[%s1661_s0 + $0x38] sm:$0xff]  ;;  %v991_v20 = vld [vmem:[%s1665_s4 + $0x8] sm:$0xff] }
   0x8   :  { %1191 = vmatpush3.msra.mxu1 %v1443_v6  ;;  %1210 = vmatprep.subr.mxu0 %v1376_v2  ;;  %vm176_vm3 = vcmp.ge.s32.totalorder %v175_v19, 64  ;;  %vm177_vm4 = vcmp.lt.s32.totalorder %v175_v19, 96 }
   0x9   :  { %1192 = vmatprep.subr.mxu1 %v1376_v2  ;;  %1211 = vmatpush3.msra.mxu0 %v1435_v5  ;;  %vm1484_vm5 = vmand %vm176_vm3, %vm177_vm4 }
   0xa   :  { %1193 = vmatpush3.msra.mxu1 %v1453_v7  ;;  %1212 = vmatprep.subr.mxu0 %v1376_v2 }
   0xb   :  { %1195 = vmatmul.mubr.f32.vlgmr.msra.gmra.mxu1 %v1376_v2  ;;  %1197 = vmatprep.subr.mxu1 %v1376_v2 }
   0xc   :  { %1198 = vmatpush3.msra.mxu1 %v1426_v3  ;;  %1205 = vmatprep.mubr.msk.f32.mxu1 %vm1377_vm2, %v1376_v2 }
   0xd   :  { %1199 = vmatprep.subr.mxu1 %v1376_v2  ;;  %1213 = vmatpush3.msra.mxu0 %v1443_v6 }
   0xe   :  { %1200 = vmatpush3.msra.mxu1 %v1435_v5  ;;  %1214 = vmatprep.subr.mxu0 %v1376_v2 }
   0xf   :  { %1201 = vmatprep.subr.mxu1 %v1376_v2  ;;  %1215 = vmatpush3.msra.mxu0 %v1453_v7 }
  0x10   :  { %1202 = vmatpush3.msra.mxu1 %v1443_v6  ;;  %1230 = vmatprep.subr.mxu0 %v1376_v2 }
  0x11   :  { %1203 = vmatprep.subr.mxu1 %v1376_v2  ;;  %1177 = vmatprep.mubr.msk.f32.mxu0 %vm40_vm1, %v26_v48 }
  0x12   :  { %1204 = vmatpush3.msra.mxu1 %v1453_v7  ;;  %1178 = vmatmul.mubr.msk.f32.gmra.mxu0 %vm40_vm1, %v27_v49 }
  0x13   :  { %1219 = vmatprep.subr.mxu1 %v1376_v2  ;;  %1180 = vmatprep.mubr.msk.f32.mxu0 %vm40_vm1, %v28_v50 }
  0x16   :  { %1181 = vmatmul.mubr.msk.f32.gmra.mxu0 %vm40_vm1, %v29_v51 }
  0x17   :  { %1183 = vmatprep.mubr.msk.f32.mxu0 %vm40_vm1, %v30_v52 }
  0x1a   :  { %1184 = vmatmul.mubr.msk.f32.gmra.mxu0 %vm40_vm1, %v31_v53 }
  0x1b   :  { %1216 = vmatprep.mubr.msk.f32.mxu0 %vm1377_vm2, %v1376_v2 }
  0xc4   :  { %v1176_v8 = vpop.f32.mrf.mxu0 }
  0xc5   :  { %v141_v33 = vadd.f32 %v1176_v8, %v1481_v9 }
  0xc6   :  { %v135_v10 = vpop.f32.mrf.mxu0 }
  0xc7   :  { %v136_v11 = vadd.f32 %v1481_v9, %v135_v10 }
  0xcb   :  { %v253_v12 = vpop.f32.mrf.mxu1 }
  0xcc   :  { %v257_v13 = vadd.f32 %v253_v12, %v136_v11 }
  0xcd   :  { %v1196_v14 = vpop.f32.mrf.mxu1 }
  0xce   :  { %v1101_v15 = vmul.f32 -1.442695, %v257_v13 }
  0xd0   :  { %1290 = vpow2.f32 %v1101_v15 }
  0xd1   :  { %1292 = vtanh.f32 %v257_v13 }
  0xd2   :  { %v1179_v58 = vpop.f32.mrf.mxu0 }
  0xd4   :  { %v145_v59 = vpop.f32.mrf.mxu0 }
  0xd5   :  { %v146_v0 = vadd.f32 %v1481_v9, %v145_v59 }
  0xd6   :  { %v1549_v60 = vpop.f32.mrf.mxu0 }
  0xd8   :  { %v1551_v61 = vpop.f32.mrf.mxu0 }
  0xda   :  { %v1553_v62 = vpop.f32.mrf.mxu0 }
  0xdc   :  { %v1555_v63 = vpop.f32.mrf.mxu0 }
  0xdd   :  { %v1291_v16 = vpop.eup %1290 }
  0xde   :  { %v262_v17 = vadd.f32 1.0, %v1291_v16  ;;  %v1293_v21 = vpop.eup %1292 }
  0xe0   :  { %1294 = vrcp.f32 %v262_v17 }
  0xed   :  { %v1295_v22 = vpop.eup %1294 }
  0xee   :  { %v265_v23 = vsel %vm1484_vm5, %v1293_v21, %v1295_v22 }
  0xef   :  { %268 = vrot.lane.b32.xlu0 %v265_v23, %s1378_s3  ;;  %v266_v26 = vmul.f32 0.0, %v265_v23 }
 0x161   :  { %v269_v24 = vpop.permute.xlu0 %268 }
 0x162   :  { %v271_v25 = vmul.f32 %v269_v24, %v265_v23 }
 0x164   :  { %273 = vrot.lane.b32.xlu0 %v271_v25, %s1379_s11 }
 0x1d6   :  { %v274_v27 = vpop.permute.xlu0 %273 }
 0x1d7   :  { %v276_v28 = vadd.f32 %v274_v27, %v266_v26  ;;  %v151_v26 = vadd.f32 %v1179_v58, %v1481_v9 }
 0x1d9   :  { %1296 = vtanh.f32 %v276_v28 }
 0x1e6   :  { %v1297_v29 = vpop.eup %1296 }
 0x1e7   :  { %279 = vrot.lane.b32.xlu1 %v1297_v29, %s1378_s3 }
 0x259   :  { %v280_v30 = vpop.permute.xlu1 %279 }
 0x25a   :  { %v282_v31 = vmul.f32 %v280_v30, %v265_v23 }
 0x25c   :  { %284 = vrot.lane.b32.xlu1 %v282_v31, %s1379_s11 }
 0x2ce   :  { %v285_v32 = vpop.permute.xlu1 %284 }
 0x2cf   :  { %1206 = vmatmul.mubr.msk.f32.vlgmr.msra.gmra.mxu1 %vm183_vm6, %v285_v32 }
 0x2d0   :  { %1220 = vmatpush3.msra.mxu1 %v1426_v3  ;;  %1227 = vmatprep.mubr.msk.f32.mxu1 %vm1377_vm2, %v1376_v2 }
 0x2d1   :  { %1221 = vmatprep.subr.mxu1 %v1376_v2 }
 0x2d2   :  { %1222 = vmatpush3.msra.mxu1 %v1435_v5 }
 0x2d3   :  { %1223 = vmatprep.subr.mxu1 %v1376_v2 }
 0x2d4   :  { %1224 = vmatpush3.msra.mxu1 %v1443_v6 }
 0x2d5   :  { %1225 = vmatprep.subr.mxu1 %v1376_v2 }
 0x2d6   :  { %1226 = vmatpush3.msra.mxu1 %v1453_v7 }
 0x2d7   :  { %1241 = vmatprep.subr.mxu1 %v1376_v2 }
 0x38f   :  { %v354_v34 = vpop.f32.mrf.mxu1 }
 0x390   :  { %v358_v35 = vadd.f32 %v354_v34, %v141_v33 }
 0x391   :  { %v1207_v36 = vpop.f32.mrf.mxu1 }
 0x392   :  { %v1103_v37 = vmul.f32 -1.442695, %v358_v35 }
 0x394   :  { %1298 = vpow2.f32 %v1103_v37 }
 0x395   :  { %1300 = vtanh.f32 %v358_v35 }
 0x3a1   :  { %v1299_v38 = vpop.eup %1298 }
 0x3a2   :  { %v363_v39 = vadd.f32 1.0, %v1299_v38  ;;  %v1301_v40 = vpop.eup %1300 }
 0x3a4   :  { %1302 = vrcp.f32 %v363_v39 }
 0x3b1   :  { %v1303_v41 = vpop.eup %1302 }
 0x3b2   :  { %v366_v42 = vsel %vm1484_vm5, %v1301_v40, %v1303_v41 }
 0x3b3   :  { %369 = vrot.lane.b32.xlu0 %v366_v42, %s1378_s3  ;;  %v367_v45 = vmul.f32 %v366_v42, %v276_v28 }
 0x425   :  { %v370_v43 = vpop.permute.xlu0 %369 }
 0x426   :  { %v372_v44 = vmul.f32 %v370_v43, %v366_v42 }
 0x428   :  { %374 = vrot.lane.b32.xlu1 %v372_v44, %s1379_s11 }
 0x49a   :  { %v375_v46 = vpop.permute.xlu1 %374 }
 0x49b   :  { %v377_v47 = vadd.f32 %v375_v46, %v367_v45  ;;  %v156_v45 = vadd.f32 %v1481_v9, %v1551_v61 }
 0x49d   :  { %1304 = vtanh.f32 %v377_v47 }
 0x4aa   :  { %v1305_v54 = vpop.eup %1304 }
 0x4ab   :  { %380 = vrot.lane.b32.xlu0 %v1305_v54, %s1378_s3 }
 0x51d   :  { %v381_v55 = vpop.permute.xlu0 %380 }
 0x51e   :  { %v383_v56 = vmul.f32 %v381_v55, %v366_v42 }
 0x520   :  { %385 = vrot.lane.b32.xlu1 %v383_v56, %s1379_s11 }
 0x592   :  { %v386_v57 = vpop.permute.xlu1 %385 }
 0x593   :  { %1217 = vmatmul.mubr.msk.f32.vlgmr.msra.gmra.mxu0 %vm183_vm6, %v386_v57 }
 0x594   :  { %1231 = vmatpush3.msra.mxu0 %v1426_v3  ;;  %1238 = vmatprep.mubr.msk.f32.mxu0 %vm1377_vm2, %v1376_v2 }
 0x595   :  { %1232 = vmatprep.subr.mxu0 %v1376_v2 }
 0x596   :  { %1233 = vmatpush3.msra.mxu0 %v1435_v5 }
 0x597   :  { %1234 = vmatprep.subr.mxu0 %v1376_v2 }
 0x598   :  { %1235 = vmatpush3.msra.mxu0 %v1443_v6 }
 0x599   :  { %1236 = vmatprep.subr.mxu0 %v1376_v2 }
 0x59a   :  { %1237 = vmatpush3.msra.mxu0 %v1453_v7 }
 0x59b   :  { %1252 = vmatprep.subr.mxu0 %v1376_v2 }
 0x653   :  { %v455_v1 = vpop.f32.mrf.mxu0 }
 0x654   :  { %v459_v4 = vadd.f32 %v455_v1, %v146_v0 }
 0x655   :  { %v1218_v8 = vpop.f32.mrf.mxu0 }
 0x656   :  { %v1105_v10 = vmul.f32 -1.442695, %v459_v4  ;;  %v161_v8 = vadd.f32 %v1549_v60, %v1481_v9 }
 0x658   :  { %1306 = vpow2.f32 %v1105_v10 }
 0x659   :  { %1308 = vtanh.f32 %v459_v4 }
 0x665   :  { %v1307_v11 = vpop.eup %1306 }
 0x666   :  { %v464_v12 = vadd.f32 1.0, %v1307_v11  ;;  %v1309_v13 = vpop.eup %1308 }
 0x668   :  { %1310 = vrcp.f32 %v464_v12 }
 0x675   :  { %v1311_v14 = vpop.eup %1310 }
 0x676   :  { %v467_v15 = vsel %vm1484_vm5, %v1309_v13, %v1311_v14 }
 0x677   :  { %470 = vrot.lane.b32.xlu0 %v467_v15, %s1378_s3  ;;  %v468_v18 = vmul.f32 %v467_v15, %v377_v47 }
 0x6e9   :  { %v471_v16 = vpop.permute.xlu0 %470 }
 0x6ea   :  { %v473_v17 = vmul.f32 %v471_v16, %v467_v15 }
 0x6ec   :  { %475 = vrot.lane.b32.xlu1 %v473_v17, %s1379_s11 }
 0x75e   :  { %v476_v19 = vpop.permute.xlu1 %475 }
 0x75f   :  { %v478_v21 = vadd.f32 %v476_v19, %v468_v18 }
 0x761   :  { %1312 = vtanh.f32 %v478_v21 }
 0x76e   :  { %v1313_v22 = vpop.eup %1312 }
 0x76f   :  { %481 = vrot.lane.b32.xlu0 %v1313_v22, %s1378_s3 }
 0x7e1   :  { %v482_v23 = vpop.permute.xlu0 %481 }
 0x7e2   :  { %v484_v24 = vmul.f32 %v482_v23, %v467_v15 }
 0x7e4   :  { %486 = vrot.lane.b32.xlu1 %v484_v24, %s1379_s11  ;;  %v166_v24 = vadd.f32 %v1481_v9, %v1555_v63 }
 0x856   :  { %v487_v25 = vpop.permute.xlu1 %486 }
 0x857   :  { %1228 = vmatmul.mubr.msk.f32.vlgmr.msra.gmra.mxu1 %vm183_vm6, %v487_v25 }
 0x858   :  { %1242 = vmatpush3.msra.mxu1 %v1426_v3  ;;  %1249 = vmatprep.mubr.msk.f32.mxu1 %vm1377_vm2, %v1376_v2 }
 0x859   :  { %1243 = vmatprep.subr.mxu1 %v1376_v2 }
 0x85a   :  { %1244 = vmatpush3.msra.mxu1 %v1435_v5 }
 0x85b   :  { %1245 = vmatprep.subr.mxu1 %v1376_v2 }
 0x85c   :  { %1246 = vmatpush3.msra.mxu1 %v1443_v6 }
 0x85d   :  { %1247 = vmatprep.subr.mxu1 %v1376_v2 }
 0x85e   :  { %1248 = vmatpush3.msra.mxu1 %v1453_v7 }
 0x85f   :  { %1263 = vmatprep.subr.mxu1 %v1376_v2 }
 0x917   :  { %v556_v27 = vpop.f32.mrf.mxu1 }
 0x918   :  { %v560_v28 = vadd.f32 %v556_v27, %v151_v26 }
 0x919   :  { %v1229_v29 = vpop.f32.mrf.mxu1 }
 0x91a   :  { %v1107_v30 = vmul.f32 -1.442695, %v560_v28 }
 0x91c   :  { %1314 = vpow2.f32 %v1107_v30 }
 0x91d   :  { %1316 = vtanh.f32 %v560_v28 }
 0x929   :  { %v1315_v31 = vpop.eup %1314 }
 0x92a   :  { %v565_v32 = vadd.f32 1.0, %v1315_v31  ;;  %v1317_v33 = vpop.eup %1316 }
 0x92c   :  { %1318 = vrcp.f32 %v565_v32 }
 0x939   :  { %v1319_v34 = vpop.eup %1318 }
 0x93a   :  { %v568_v35 = vsel %vm1484_vm5, %v1317_v33, %v1319_v34 }
 0x93b   :  { %571 = vrot.lane.b32.xlu0 %v568_v35, %s1378_s3  ;;  %v569_v38 = vmul.f32 %v568_v35, %v478_v21 }
 0x9ad   :  { %v572_v36 = vpop.permute.xlu0 %571 }
 0x9ae   :  { %v574_v37 = vmul.f32 %v572_v36, %v568_v35 }
 0x9b0   :  { %576 = vrot.lane.b32.xlu1 %v574_v37, %s1379_s11 }
 0xa22   :  { %v577_v39 = vpop.permute.xlu1 %576 }
 0xa23   :  { %v579_v40 = vadd.f32 %v577_v39, %v569_v38 }
 0xa25   :  { %1320 = vtanh.f32 %v579_v40 }
 0xa32   :  { %v1321_v41 = vpop.eup %1320 }
 0xa33   :  { %582 = vrot.lane.b32.xlu0 %v1321_v41, %s1378_s3 }
 0xaa5   :  { %v583_v42 = vpop.permute.xlu0 %582 }
 0xaa6   :  { %v585_v43 = vmul.f32 %v583_v42, %v568_v35  ;;  %v171_v42 = vadd.f32 %v1553_v62, %v1481_v9 }
 0xaa8   :  { %587 = vrot.lane.b32.xlu1 %v585_v43, %s1379_s11 }
 0xb1a   :  { %v588_v44 = vpop.permute.xlu1 %587 }
 0xb1b   :  { %1239 = vmatmul.mubr.msk.f32.vlgmr.msra.gmra.mxu0 %vm183_vm6, %v588_v44 }
 0xb1c   :  { %1253 = vmatpush3.msra.mxu0 %v1426_v3  ;;  %1260 = vmatprep.mubr.msk.f32.mxu0 %vm1377_vm2, %v1376_v2 }
 0xb1d   :  { %1254 = vmatprep.subr.mxu0 %v1376_v2 }
 0xb1e   :  { %1255 = vmatpush3.msra.mxu0 %v1435_v5 }
 0xb1f   :  { %1256 = vmatprep.subr.mxu0 %v1376_v2 }
 0xb20   :  { %1257 = vmatpush3.msra.mxu0 %v1443_v6 }
 0xb21   :  { %1258 = vmatprep.subr.mxu0 %v1376_v2 }
 0xb22   :  { %1259 = vmatpush3.msra.mxu0 %v1453_v7 }
 0xb23   :  { %1274 = vmatprep.subr.mxu0 %v1376_v2 }
 0xbdb   :  { %v657_v46 = vpop.f32.mrf.mxu0 }
 0xbdc   :  { %v661_v47 = vadd.f32 %v657_v46, %v156_v45 }
 0xbdd   :  { %v1240_v48 = vpop.f32.mrf.mxu0 }
 0xbde   :  { %v1109_v49 = vmul.f32 -1.442695, %v661_v47 }
 0xbe0   :  { %1322 = vpow2.f32 %v1109_v49 }
 0xbe1   :  { %1324 = vtanh.f32 %v661_v47 }
 0xbed   :  { %v1323_v50 = vpop.eup %1322 }
 0xbee   :  { %v666_v51 = vadd.f32 1.0, %v1323_v50  ;;  %v1325_v52 = vpop.eup %1324 }
 0xbf0   :  { %1326 = vrcp.f32 %v666_v51 }
 0xbfd   :  { %v1327_v53 = vpop.eup %1326 }
 0xbfe   :  { %v669_v54 = vsel %vm1484_vm5, %v1325_v52, %v1327_v53 }
 0xbff   :  { %672 = vrot.lane.b32.xlu0 %v669_v54, %s1378_s3  ;;  %v670_v57 = vmul.f32 %v669_v54, %v579_v40 }
 0xc71   :  { %v673_v55 = vpop.permute.xlu0 %672 }
 0xc72   :  { %v675_v56 = vmul.f32 %v673_v55, %v669_v54  ;;  %v993_v55 = vld [vmem:[%s1665_s4 + $0x18] sm:$0xff] }
 0xc74   :  { %677 = vrot.lane.b32.xlu1 %v675_v56, %s1379_s11  ;;  %v992_v56 = vld [vmem:[%s1665_s4 + $0x10] sm:$0xff] }
 0xce6   :  { %v678_v58 = vpop.permute.xlu1 %677 }
 0xce7   :  { %v680_v59 = vadd.f32 %v678_v58, %v670_v57  ;;  %v990_v57 = vld [vmem:[%s1665_s4] sm:$0xff]  ;;  %s1083_s4 = sshll.u32 %s1380_s8, 4  ;;  %s1084_s4 = int_to_ptr.vmem [resolvable:$true] %s1083_s4 }
 0xce8   :  { %s1354_s9 = scalar_lea.vmem %s1084_s4, 128  ;;  %p1359_p1 = scmp.lt.s32.totalorder %s1084_s4, %s1084_s4 }
 0xce9   :  { %1328 = vtanh.f32 %v680_v59  ;;  %p1355_p0 = scmp.ne.s32.totalorder %s1084_s4, %s1354_s9  ;;  %p1360_p2 = scmp.lt.s32.totalorder %s1354_s9, %s1354_s9 }
 0xceb   :  { %p1361_p3 = por %p1360_p2, %p1359_p1 }
 0xced   :  { %p1362_p4 = pnand %p1361_p3, %p1355_p0 }
 0xcf6   :  { %v1329_v61 = vpop.eup %1328 }
 0xcf7   :  { %683 = vrot.lane.b32.xlu0 %v1329_v61, %s1378_s3 }
 0xd69   :  { %v684_v0 = vpop.permute.xlu0 %683 }
 0xd6a   :  { %v686_v1 = vmul.f32 %v684_v0, %v669_v54 }
 0xd6c   :  { %688 = vrot.lane.b32.xlu1 %v686_v1, %s1379_s11  ;;  %v1116_v1 = vld [vmem:[%s1666_s5] ss:$0 sm:$0xff] }
 0xdde   :  { %v689_v4 = vpop.permute.xlu1 %688 }
 0xddf   :  { %1250 = vmatmul.mubr.msk.f32.vlgmr.msra.gmra.mxu1 %vm183_vm6, %v689_v4 }
 0xde0   :  { %1264 = vmatpush3.msra.mxu1 %v1426_v3  ;;  %1271 = vmatprep.mubr.msk.f32.mxu1 %vm1377_vm2, %v1376_v2 }
 0xde1   :  { %1265 = vmatprep.subr.mxu1 %v1376_v2 }
 0xde2   :  { %1266 = vmatpush3.msra.mxu1 %v1435_v5 }
 0xde3   :  { %1267 = vmatprep.subr.mxu1 %v1376_v2 }
 0xde4   :  { %1268 = vmatpush3.msra.mxu1 %v1443_v6 }
 0xde5   :  { %1269 = vmatprep.subr.mxu1 %v1376_v2 }
 0xde6   :  { %1270 = vmatpush3.msra.mxu1 %v1453_v7 }
 0xe9f   :  { %v758_v10 = vpop.f32.mrf.mxu1 }
 0xea0   :  { %v762_v3 = vadd.f32 %v758_v10, %v161_v8 }
 0xea1   :  { %v1251_v11 = vpop.f32.mrf.mxu1 }
 0xea2   :  { %v1111_v12 = vmul.f32 -1.442695, %v762_v3 }
 0xea4   :  { %1330 = vpow2.f32 %v1111_v12 }
 0xea5   :  { %1332 = vtanh.f32 %v762_v3 }
 0xeb1   :  { %v1331_v13 = vpop.eup %1330 }
 0xeb2   :  { %v767_v14 = vadd.f32 1.0, %v1331_v13  ;;  %v1333_v5 = vpop.eup %1332 }
 0xeb4   :  { %1334 = vrcp.f32 %v767_v14 }
 0xec1   :  { %v1335_v15 = vpop.eup %1334 }
 0xec2   :  { %v770_v6 = vsel %vm1484_vm5, %v1333_v5, %v1335_v15 }
 0xec3   :  { %773 = vrot.lane.b32.xlu0 %v770_v6, %s1378_s3  ;;  %v771_v60 = vmul.f32 %v770_v6, %v680_v59 }
 0xf35   :  { %v774_v7 = vpop.permute.xlu0 %773 }
 0xf36   :  { %v776_v16 = vmul.f32 %v774_v7, %v770_v6 }
 0xf38   :  { %778 = vrot.lane.b32.xlu1 %v776_v16, %s1379_s11 }
 0xfaa   :  { %v779_v17 = vpop.permute.xlu1 %778 }
 0xfab   :  { %v781_v18 = vadd.f32 %v779_v17, %v771_v60 }
 0xfad   :  { %1336 = vtanh.f32 %v781_v18 }
 0xfba   :  { %v1337_v19 = vpop.eup %1336 }
 0xfbb   :  { %784 = vrot.lane.b32.xlu0 %v1337_v19, %s1378_s3 }
0x102d   :  { %v785_v21 = vpop.permute.xlu0 %784 }
0x102e   :  { %v787_v22 = vmul.f32 %v785_v21, %v770_v6 }
0x1030   :  { %789 = vrot.lane.b32.xlu1 %v787_v22, %s1379_s11 }
0x10a2   :  { %v790_v23 = vpop.permute.xlu1 %789 }
0x10a3   :  { %1261 = vmatmul.mubr.msk.f32.vlgmr.msra.gmra.mxu0 %vm183_vm6, %v790_v23 }
0x10a4   :  { %1282 = vmatprep.mubr.msk.f32.mxu0 %vm1377_vm2, %v1376_v2  ;;  %1275 = vmatpush3.msra.mxu0 %v993_v55 }
0x10a5   :  { %1276 = vmatprep.subr.mxu0 %v1376_v2 }
0x10a6   :  { %1277 = vmatpush3.msra.mxu0 %v992_v56 }
0x10a7   :  { %1278 = vmatprep.subr.mxu0 %v1376_v2 }
0x10a8   :  { %1279 = vmatpush3.msra.mxu0 %v991_v20 }
0x10a9   :  { %1280 = vmatprep.subr.mxu0 %v1376_v2 }
0x10aa   :  { %1281 = vmatpush3.msra.mxu0 %v990_v57 }
0x1163   :  { %v859_v25 = vpop.f32.mrf.mxu0 }
0x1164   :  { %v863_v26 = vadd.f32 %v859_v25, %v166_v24 }
0x1165   :  { %v1262_v27 = vpop.f32.mrf.mxu0 }
0x1166   :  { %v1113_v28 = vmul.f32 -1.442695, %v863_v26 }
0x1168   :  { %1338 = vpow2.f32 %v1113_v28 }
0x1169   :  { %1340 = vtanh.f32 %v863_v26 }
0x1175   :  { %v1339_v29 = vpop.eup %1338 }
0x1176   :  { %v868_v30 = vadd.f32 1.0, %v1339_v29  ;;  %v1341_v31 = vpop.eup %1340 }
0x1178   :  { %1342 = vrcp.f32 %v868_v30 }
0x1185   :  { %v1343_v32 = vpop.eup %1342 }
0x1186   :  { %v871_v33 = vsel %vm1484_vm5, %v1341_v31, %v1343_v32 }
0x1187   :  { %874 = vrot.lane.b32.xlu0 %v871_v33, %s1378_s3  ;;  %v872_v63 = vmul.f32 %v871_v33, %v781_v18 }
0x11f9   :  { %v875_v34 = vpop.permute.xlu0 %874 }
0x11fa   :  { %v877_v35 = vmul.f32 %v875_v34, %v871_v33 }
0x11fc   :  { %879 = vrot.lane.b32.xlu1 %v877_v35, %s1379_s11 }
0x126e   :  { %v880_v36 = vpop.permute.xlu1 %879 }
0x126f   :  { %v882_v37 = vadd.f32 %v880_v36, %v872_v63 }
0x1271   :  { %1344 = vtanh.f32 %v882_v37 }
0x127e   :  { %v1345_v38 = vpop.eup %1344 }
0x127f   :  { %885 = vrot.lane.b32.xlu0 %v1345_v38, %s1378_s3 }
0x12f1   :  { %v886_v39 = vpop.permute.xlu0 %885 }
0x12f2   :  { %v888_v40 = vmul.f32 %v886_v39, %v871_v33 }
0x12f4   :  { %890 = vrot.lane.b32.xlu1 %v888_v40, %s1379_s11 }
0x1366   :  { %v891_v41 = vpop.permute.xlu1 %890 }
0x1367   :  { %1272 = vmatmul.mubr.msk.f32.vlgmr.msra.gmra.mxu1 %vm183_vm6, %v891_v41 }
0x1427   :  { %v960_v43 = vpop.f32.mrf.mxu1 }
0x1428   :  { %v964_v44 = vadd.f32 %v960_v43, %v171_v42 }
0x1429   :  { %v1273_v45 = vpop.f32.mrf.mxu1 }
0x142a   :  { %v1115_v46 = vmul.f32 -1.442695, %v964_v44 }
0x142c   :  { %1346 = vpow2.f32 %v1115_v46 }
0x142d   :  { %1348 = vtanh.f32 %v964_v44 }
0x1439   :  { %v1347_v47 = vpop.eup %1346 }
0x143a   :  { %v969_v48 = vadd.f32 1.0, %v1347_v47  ;;  %v1349_v49 = vpop.eup %1348 }
0x143c   :  { %1350 = vrcp.f32 %v969_v48 }
0x1449   :  { %v1351_v50 = vpop.eup %1350 }
0x144a   :  { %v972_v51 = vsel %vm1484_vm5, %v1349_v49, %v1351_v50 }
0x144b   :  { %975 = vrot.lane.b32.xlu0 %v972_v51, %s1378_s3  ;;  %v973_v9 = vmul.f32 %v972_v51, %v882_v37 }
0x14bd   :  { %v976_v52 = vpop.permute.xlu0 %975 }
0x14be   :  { %v978_v53 = vmul.f32 %v976_v52, %v972_v51 }
0x14c0   :  { %980 = vrot.lane.b32.xlu1 %v978_v53, %s1379_s11 }
0x1532   :  { %v981_v62 = vpop.permute.xlu1 %980 }
0x1533   :  { %v983_v54 = vadd.f32 %v981_v62, %v973_v9 }
0x1535   :  { %1352 = vtanh.f32 %v983_v54 }
0x1542   :  { %v1353_v58 = vpop.eup %1352 }
0x1543   :  { %986 = vrot.lane.b32.xlu0 %v1353_v58, %s1378_s3 }
0x15b5   :  { %v987_v59 = vpop.permute.xlu0 %986 }
0x15b6   :  { %v989_v61 = vmul.f32 %v987_v59, %v972_v51 }
0x15b8   :  { %1002 = vrot.lane.b32.xlu1 %v989_v61, %s1379_s11 }
0x162a   :  { %v1003_v0 = vpop.permute.xlu1 %1002 }
0x162b   :  { %1283 = vmatmul.mubr.msk.f32.vlgmr.msra.gmra.mxu0 %vm183_vm6, %v1003_v0 }
0x16eb   :  { %v1072_v4 = vpop.f32.mrf.mxu0 }
0x16ec   :  { %v1073_v8 = vadd.f32 %v1116_v1, %v1072_v4 }
0x16ed   :  { %v1284_v2 = vpop.f32.mrf.mxu0 }
0x16ee   :  { %1076 = vst [vmem:[#allocation2] sm:$0xff] %v1073_v8 }
0x16ef   :  { %1365 = shalt.err (!%p1362_p4)
}
0x16f0   :  { %1086 = dma.vmem_to_hbm [thread:$0]  %s1084_s4, 128, %s1667_s6, [#allocation3]  }
0x16f1   :  { %1374 = dma.done.wait [#allocation3], 128  }
0x16f2   :  { %1375 = vsyncadd [#allocation3], 4294967168 }
0x16f3   :  { %1090 = vsyncpa [#allocation3], 1 }

</bundles_post_ra>
